<compile_context>
chip_gen: v7x
topology: tpu7x:2x2x1
jax: 0.10.0
libtpu: 0.0.40
codegen_flags: <defaults>
</compile_context>

<pallas_src>
import functools

import jax
import jax.numpy as jnp
from jax.experimental import pallas as pl
from jax.experimental.pallas import tpu as pltpu

LANES = 128
MAX_TILE_ROWS = 1024     # (1024, 128) f32 block = 512 KiB per input per buffer
ROW_ALIGN = 32           # satisfies (8,128) f32 and (32,128) int8/bool tiling


def _round_up(x, m):
    return (x + m - 1) // m * m


# ----------------------------------------------------------------------------
# One-time capability probe: bool VMEM refs (avoids a wrapper-side mask copy).
# ----------------------------------------------------------------------------
_BOOL_MASK_OK = None


def _bool_mask_refs_supported():
    global _BOOL_MASK_OK
    if _BOOL_MASK_OK is None:
        def _probe(m_ref, o_ref):
            o_ref[...] = m_ref[...].astype(jnp.float32)
        try:
            out = pl.pallas_call(
                _probe,
                out_shape=jax.ShapeDtypeStruct((ROW_ALIGN, LANES), jnp.float32),
            )(jnp.ones((ROW_ALIGN, LANES), jnp.bool_))
            jax.block_until_ready(out)
            _BOOL_MASK_OK = bool(jnp.all(out == 1.0))
        except Exception:   # lowering/compile rejection -> fall back to int8
            _BOOL_MASK_OK = False
    return _BOOL_MASK_OK


# ----------------------------------------------------------------------------
# Kernel: streaming masked reduction into per-split (8, 128) accumulator slabs.
# ----------------------------------------------------------------------------
def _silog_reduce_kernel(est_ref, gt_ref, m_ref, d_ref, d2_ref, n_ref,
                         *, tile_r, nblk, blocks_per_split, need_guard):
    p = pl.program_id(0)      # stream-half / core index   ("parallel")
    i = pl.program_id(1)      # block index within half    ("arbitrary")

    @pl.when(i == 0)
    def _init():
        d_ref[...] = jnp.zeros_like(d_ref)
        d2_ref[...] = jnp.zeros_like(d2_ref)
        n_ref[...] = jnp.zeros_like(n_ref)

    def _accumulate():
        m = m_ref[...]
        if m.dtype != jnp.bool_:          # int8 fallback path
            m = m != 0

        # d = log(est) - log(gt); masked / padded / garbage lanes give d = 0.
        d = (jnp.log(jnp.where(m, est_ref[...], 1.0))
             - jnp.log(jnp.where(m, gt_ref[...], 1.0)))
        mf = m.astype(jnp.float32)

        # Reduce the (tile_r, 128) block to vreg-aligned (8, 128) partials.
        g = tile_r // 8
        d_p = jnp.sum(d.reshape(g, 8, LANES), axis=0)
        d2_p = jnp.sum((d * d).reshape(g, 8, LANES), axis=0)
        n_p = jnp.sum(mf.reshape(g, 8, LANES), axis=0)

        d_ref[0] += d_p
        d2_ref[0] += d2_p
        n_ref[0] += n_p

    if need_guard:
        # Odd nblk: the second half's last block is a clamped duplicate of
        # block nblk-1; skip its accumulation (scalar guard, no row mask).
        pl.when(p * blocks_per_split + i < nblk)(_accumulate)
    else:
        _accumulate()


# ----------------------------------------------------------------------------
# Wrapper
# ----------------------------------------------------------------------------
@functools.partial(jax.jit, static_argnames=("variance_focus", "bool_mask_ok"))
def _silog_loss_impl(depth_est, depth_gt, mask, variance_focus, bool_mask_ok):
    n = depth_est.size
    est = depth_est.reshape(-1).astype(jnp.float32)
    gt = depth_gt.reshape(-1).astype(jnp.float32)

    mk = mask.reshape(-1)
    if mk.dtype == jnp.bool_:
        if not bool_mask_ok:
            mk = mk.astype(jnp.int8)
    elif mk.dtype != jnp.int8:
        mk = (mk != 0).astype(jnp.int8)

    rows_data = -(-n // LANES)                            # rows that hold data
    tile_r = min(MAX_TILE_ROWS, _round_up(rows_data, ROW_ALIGN))
    rows = _round_up(rows_data, tile_r)                   # kernel footprint
    nblk = rows // tile_r

    # est/gt: free reshape in the common (lane-aligned, >= one block) case.
    # Partial edge-block garbage beyond rows_eg is masked out by the mask.
    rows_eg = max(rows_data, tile_r)
    n_eg = rows_eg * LANES
    if n != n_eg:                                         # copy only if needed
        est = jnp.pad(est, (0, n_eg - n), constant_values=1.0)
        gt = jnp.pad(gt, (0, n_eg - n), constant_values=1.0)
    est = est.reshape(rows_eg, LANES)
    gt = gt.reshape(rows_eg, LANES)

    # Mask: must be defined (0) over the full rows x 128 footprint so the
    # kernel needs no per-block row masking.  1 B/elem, pads only when needed.
    n_m = rows * LANES
    if n != n_m:
        mk = jnp.pad(mk, (0, n_m - n), constant_values=0)
    mk = mk.reshape(rows, LANES)

    num_splits = 2 if nblk >= 2 else 1     # 2-way split -> both TCs on v7x
    bps = -(-nblk // num_splits)           # blocks per split
    need_guard = num_splits * bps != nblk

    if need_guard:
        def in_map(p, i):
            return (jnp.minimum(p * bps + i, nblk - 1), 0)
    else:
        def in_map(p, i):
            return (p * bps + i, 0)

    in_spec = pl.BlockSpec((tile_r, LANES), in_map)
    out_spec = pl.BlockSpec((1, 8, LANES), lambda p, i: (p, 0, 0))
    out_sds = jax.ShapeDtypeStruct((num_splits, 8, LANES), jnp.float32)

    kernel = functools.partial(
        _silog_reduce_kernel,
        tile_r=tile_r, nblk=nblk, blocks_per_split=bps, need_guard=need_guard)

    acc_d, acc_d2, acc_n = pl.pallas_call(
        kernel,
        out_shape=(out_sds, out_sds, out_sds),
        grid_spec=pltpu.PrefetchScalarGridSpec(
            num_scalar_prefetch=0,
            grid=(num_splits, bps),
            in_specs=[in_spec, in_spec, in_spec],
            out_specs=(out_spec, out_spec, out_spec),
        ),
        compiler_params=pltpu.CompilerParams(
            dimension_semantics=("parallel", "arbitrary"),
            vmem_limit_bytes=32 * 1024 * 1024,
        ),
        cost_estimate=pl.CostEstimate(
            flops=8 * n,
            transcendentals=2 * n,
            bytes_accessed=9 * n + 3 * num_splits * 8 * LANES * 4,
        ),
    )(est, gt, mk)

    s_d = jnp.sum(acc_d)
    s_d2 = jnp.sum(acc_d2)
    cnt = jnp.sum(acc_n)        # all-False mask -> NaN (matches PyTorch)
    mean_d = s_d / cnt
    mean_d2 = s_d2 / cnt
    return jnp.sqrt(mean_d2 - variance_focus * mean_d * mean_d) * 10.0


def silog_loss(depth_est, depth_gt, mask, variance_focus):
    return _silog_loss_impl(depth_est, depth_gt, mask,
                            variance_focus=float(variance_focus),
                            bool_mask_ok=_bool_mask_refs_supported())


def _reference_silog(depth_est, depth_gt, mask, variance_focus):
    # Pure-JAX reference mirroring the PyTorch masked-index semantics.
    m = mask.astype(jnp.float32)
    cnt = jnp.sum(m)
    d = jnp.where(mask,
                  jnp.log(jnp.where(mask, depth_est, 1.0))
                  - jnp.log(jnp.where(mask, depth_gt, 1.0)),
                  0.0)
    mean_d = jnp.sum(d) / cnt
    mean_d2 = jnp.sum(d * d) / cnt
    return jnp.sqrt(mean_d2 - variance_focus * mean_d ** 2) * 10.0


if __name__ == "__main__":
    variance_focus = 0.85  # deterministic "parameter" from __init__
    key = jax.random.PRNGKey(0)
    k1, k2, k3 = jax.random.split(key, 3)

    shape = (2, 4, 16, 16)  # NCHW, like PyTorch
    depth_est = jax.random.uniform(k1, shape, jnp.float32, 0.5, 5.0)
    depth_gt = jax.random.uniform(k2, shape, jnp.float32, 0.5, 5.0)
    mask = jax.random.bernoulli(k3, p=0.7, shape=shape)

    loss = silog_loss(depth_est, depth_gt, mask, variance_focus)
    jax.block_until_ready(loss)

    ref = _reference_silog(depth_est, depth_gt, mask, variance_focus)
    assert jnp.allclose(loss, ref, rtol=1e-4, atol=1e-5), (loss, ref)

    print("KERNEL_OK")
</pallas_src>

<mosaic_0001>
module attributes {stable_mosaic.version = 11 : i64} {
  func.func @_probe(%arg0: memref<32x128xi32, #tpu.memory_space<vmem>>, %arg1: memref<32x128xf32, #tpu.memory_space<vmem>>) attributes {dimension_semantics = [], scalar_prefetch = 0 : i64, scratch_operands = 0 : i64, tpu.core_type = #tpu.core_type<tc>} {
    %c0 = arith.constant 0 : index
    %c0_0 = arith.constant 0 : index
    %0 = vector.load %arg0[%c0, %c0_0] : memref<32x128xi32, #tpu.memory_space<vmem>>, vector<32x128xi32>
    %cst = arith.constant dense<0> : vector<32x128xi32>
    %1 = arith.cmpi ne, %0, %cst : vector<32x128xi32>
    %2 = arith.extui %1 : vector<32x128xi1> to vector<32x128xi32>
    %3 = arith.sitofp %2 : vector<32x128xi32> to vector<32x128xf32>
    %c0_1 = arith.constant 0 : index
    %c0_2 = arith.constant 0 : index
    %4 = vector.load %arg1[%c0_1, %c0_2] : memref<32x128xf32, #tpu.memory_space<vmem>>, vector<32x128xf32>
    tpu.vector_store %arg1[%c0_1, %c0_2], %3 {strides = array<i32>} : memref<32x128xf32, #tpu.memory_space<vmem>>, vector<32x128xf32>,
    return
  }
}

module attributes {stable_mosaic.version = 11 : i64} {
  func.func @_silog_reduce_kernel(%arg0: i32, %arg1: i32, %arg2: memref<32x128xf32, #tpu.memory_space<vmem>>, %arg3: memref<32x128xf32, #tpu.memory_space<vmem>>, %arg4: memref<32x128xi8, #tpu.memory_space<vmem>>, %arg5: memref<1x8x128xf32, #tpu.memory_space<vmem>>, %arg6: memref<1x8x128xf32, #tpu.memory_space<vmem>>, %arg7: memref<1x8x128xf32, #tpu.memory_space<vmem>>) attributes {dimension_semantics = [#tpu.dimension_semantics<parallel>, #tpu.dimension_semantics<arbitrary>], iteration_bounds = array<i64: 1, 1>, scalar_prefetch = 0 : i64, scratch_operands = 0 : i64, tpu.core_type = #tpu.core_type<tc>, window_params = [{transform_indices = @transform_0, window_bounds = array<i64: 32, 128>}, {transform_indices = @transform_1, window_bounds = array<i64: 32, 128>}, {transform_indices = @transform_2, window_bounds = array<i64: 32, 128>}, {transform_indices = @transform_3, window_bounds = array<i64: 1, 8, 128>}, {transform_indices = @transform_4, window_bounds = array<i64: 1, 8, 128>}, {transform_indices = @transform_5, window_bounds = array<i64: 1, 8, 128>}]} {
    %c0_i32 = arith.constant 0 : i32
    %0 = arith.cmpi eq, %arg1, %c0_i32 : i32
    %1 = arith.extui %0 : i1 to i32
    %c0_i32_0 = arith.constant 0 : i32
    %2 = arith.cmpi ne, %1, %c0_i32_0 : i32
    scf.if %2 {
      %cst_28 = arith.constant 0.000000e+00 : f32
      %42 = vector.broadcast %cst_28 : f32 to vector<1x8x128xf32>
      %c0_29 = arith.constant 0 : index
      %c0_30 = arith.constant 0 : index
      %c0_31 = arith.constant 0 : index
      %43 = vector.load %arg5[%c0_29, %c0_30, %c0_31] : memref<1x8x128xf32, #tpu.memory_space<vmem>>, vector<1x8x128xf32>
      tpu.vector_store %arg5[%c0_29, %c0_30, %c0_31], %42 {strides = array<i32>} : memref<1x8x128xf32, #tpu.memory_space<vmem>>, vector<1x8x128xf32>,
      %cst_32 = arith.constant 0.000000e+00 : f32
      %44 = vector.broadcast %cst_32 : f32 to vector<1x8x128xf32>
      %c0_33 = arith.constant 0 : index
      %c0_34 = arith.constant 0 : index
      %c0_35 = arith.constant 0 : index
      %45 = vector.load %arg6[%c0_33, %c0_34, %c0_35] : memref<1x8x128xf32, #tpu.memory_space<vmem>>, vector<1x8x128xf32>
      tpu.vector_store %arg6[%c0_33, %c0_34, %c0_35], %44 {strides = array<i32>} : memref<1x8x128xf32, #tpu.memory_space<vmem>>, vector<1x8x128xf32>,
      %cst_36 = arith.constant 0.000000e+00 : f32
      %46 = vector.broadcast %cst_36 : f32 to vector<1x8x128xf32>
      %c0_37 = arith.constant 0 : index
      %c0_38 = arith.constant 0 : index
      %c0_39 = arith.constant 0 : index
      %47 = vector.load %arg7[%c0_37, %c0_38, %c0_39] : memref<1x8x128xf32, #tpu.memory_space<vmem>>, vector<1x8x128xf32>
      tpu.vector_store %arg7[%c0_37, %c0_38, %c0_39], %46 {strides = array<i32>} : memref<1x8x128xf32, #tpu.memory_space<vmem>>, vector<1x8x128xf32>,
    } else {
    }
    %c0 = arith.constant 0 : index
    %c0_1 = arith.constant 0 : index
    %3 = vector.load %arg4[%c0, %c0_1] : memref<32x128xi8, #tpu.memory_space<vmem>>, vector<32x128xi8>
    %c0_i8 = arith.constant 0 : i8
    %4 = vector.broadcast %c0_i8 : i8 to vector<32x128xi8>
    %5 = arith.cmpi ne, %3, %4 : vector<32x128xi8>
    %c0_2 = arith.constant 0 : index
    %c0_3 = arith.constant 0 : index
    %6 = vector.load %arg2[%c0_2, %c0_3] : memref<32x128xf32, #tpu.memory_space<vmem>>, vector<32x128xf32>
    %cst = arith.constant 1.000000e+00 : f32
    %7 = vector.broadcast %cst : f32 to vector<32x128xf32>
    %8 = arith.select %5, %6, %7 : vector<32x128xi1>, vector<32x128xf32>
    %9 = math.log %8 : vector<32x128xf32>
    %c0_4 = arith.constant 0 : index
    %c0_5 = arith.constant 0 : index
    %10 = vector.load %arg3[%c0_4, %c0_5] : memref<32x128xf32, #tpu.memory_space<vmem>>, vector<32x128xf32>
    %cst_6 = arith.constant 1.000000e+00 : f32
    %11 = vector.broadcast %cst_6 : f32 to vector<32x128xf32>
    %12 = arith.select %5, %10, %11 : vector<32x128xi1>, vector<32x128xf32>
    %13 = math.log %12 : vector<32x128xf32>
    %14 = arith.subf %9, %13 : vector<32x128xf32>
    %15 = arith.extui %5 : vector<32x128xi1> to vector<32x128xi32>
    %16 = arith.sitofp %15 : vector<32x128xi32> to vector<32x128xf32>
    %17 = vector.shape_cast %14 : vector<32x128xf32> to vector<4x8x128xf32>
    %cst_7 = arith.constant dense<0.000000e+00> : vector<8x128xf32>
    %18 = vector.multi_reduction <add>, %17, %cst_7 [0] : vector<4x8x128xf32> to vector<8x128xf32>
    %19 = arith.mulf %14, %14 : vector<32x128xf32>
    %20 = vector.shape_cast %19 : vector<32x128xf32> to vector<4x8x128xf32>
    %cst_8 = arith.constant dense<0.000000e+00> : vector<8x128xf32>
    %21 = vector.multi_reduction <add>, %20, %cst_8 [0] : vector<4x8x128xf32> to vector<8x128xf32>
    %22 = vector.shape_cast %16 : vector<32x128xf32> to vector<4x8x128xf32>
    %cst_9 = arith.constant dense<0.000000e+00> : vector<8x128xf32>
    %23 = vector.multi_reduction <add>, %22, %cst_9 [0] : vector<4x8x128xf32> to vector<8x128xf32>
    %c0_10 = arith.constant 0 : index
    %c0_11 = arith.constant 0 : index
    %c0_12 = arith.constant 0 : index
    %24 = vector.load %arg5[%c0_10, %c0_11, %c0_12] : memref<1x8x128xf32, #tpu.memory_space<vmem>>, vector<1x8x128xf32>
    %25 = vector.shape_cast %24 : vector<1x8x128xf32> to vector<8x128xf32>
    %26 = arith.addf %25, %18 : vector<8x128xf32>
    %c0_13 = arith.constant 0 : index
    %c0_14 = arith.constant 0 : index
    %c0_15 = arith.constant 0 : index
    %27 = vector.load %arg5[%c0_13, %c0_14, %c0_15] : memref<1x8x128xf32, #tpu.memory_space<vmem>>, vector<1x8x128xf32>
    %28 = vector.shape_cast %27 : vector<1x8x128xf32> to vector<8x128xf32>
    %29 = vector.shape_cast %26 : vector<8x128xf32> to vector<1x8x128xf32>
    tpu.vector_store %arg5[%c0_13, %c0_14, %c0_15], %29 {strides = array<i32>} : memref<1x8x128xf32, #tpu.memory_space<vmem>>, vector<1x8x128xf32>,
    %c0_16 = arith.constant 0 : index
    %c0_17 = arith.constant 0 : index
    %c0_18 = arith.constant 0 : index
    %30 = vector.load %arg6[%c0_16, %c0_17, %c0_18] : memref<1x8x128xf32, #tpu.memory_space<vmem>>, vector<1x8x128xf32>
    %31 = vector.shape_cast %30 : vector<1x8x128xf32> to vector<8x128xf32>
    %32 = arith.addf %31, %21 : vector<8x128xf32>
    %c0_19 = arith.constant 0 : index
    %c0_20 = arith.constant 0 : index
    %c0_21 = arith.constant 0 : index
    %33 = vector.load %arg6[%c0_19, %c0_20, %c0_21] : memref<1x8x128xf32, #tpu.memory_space<vmem>>, vector<1x8x128xf32>
    %34 = vector.shape_cast %33 : vector<1x8x128xf32> to vector<8x128xf32>
    %35 = vector.shape_cast %32 : vector<8x128xf32> to vector<1x8x128xf32>
    tpu.vector_store %arg6[%c0_19, %c0_20, %c0_21], %35 {strides = array<i32>} : memref<1x8x128xf32, #tpu.memory_space<vmem>>, vector<1x8x128xf32>,
    %c0_22 = arith.constant 0 : index
    %c0_23 = arith.constant 0 : index
    %c0_24 = arith.constant 0 : index
    %36 = vector.load %arg7[%c0_22, %c0_23, %c0_24] : memref<1x8x128xf32, #tpu.memory_space<vmem>>, vector<1x8x128xf32>
    %37 = vector.shape_cast %36 : vector<1x8x128xf32> to vector<8x128xf32>
    %38 = arith.addf %37, %23 : vector<8x128xf32>
    %c0_25 = arith.constant 0 : index
    %c0_26 = arith.constant 0 : index
    %c0_27 = arith.constant 0 : index
    %39 = vector.load %arg7[%c0_25, %c0_26, %c0_27] : memref<1x8x128xf32, #tpu.memory_space<vmem>>, vector<1x8x128xf32>
    %40 = vector.shape_cast %39 : vector<1x8x128xf32> to vector<8x128xf32>
    %41 = vector.shape_cast %38 : vector<8x128xf32> to vector<1x8x128xf32>
    tpu.vector_store %arg7[%c0_25, %c0_26, %c0_27], %41 {strides = array<i32>} : memref<1x8x128xf32, #tpu.memory_space<vmem>>, vector<1x8x128xf32>,
    return
  }
  func.func @transform_0(%arg0: i32, %arg1: i32) -> (i32, i32) {
    %c1_i32 = arith.constant 1 : i32
    %0 = arith.muli %arg0, %c1_i32 : i32
    %1 = arith.addi %0, %arg1 : i32
    %c0_i32 = arith.constant 0 : i32
    %c0_i32_0 = arith.constant 0 : i32
    return %1, %c0_i32 : i32, i32
  }
  func.func @transform_1(%arg0: i32, %arg1: i32) -> (i32, i32) {
    %c1_i32 = arith.constant 1 : i32
    %0 = arith.muli %arg0, %c1_i32 : i32
    %1 = arith.addi %0, %arg1 : i32
    %c0_i32 = arith.constant 0 : i32
    %c0_i32_0 = arith.constant 0 : i32
    return %1, %c0_i32 : i32, i32
  }
  func.func @transform_2(%arg0: i32, %arg1: i32) -> (i32, i32) {
    %c1_i32 = arith.constant 1 : i32
    %0 = arith.muli %arg0, %c1_i32 : i32
    %1 = arith.addi %0, %arg1 : i32
    %c0_i32 = arith.constant 0 : i32
    %c0_i32_0 = arith.constant 0 : i32
    return %1, %c0_i32 : i32, i32
  }
  func.func @transform_3(%arg0: i32, %arg1: i32) -> (i32, i32, i32) {
    %c0_i32 = arith.constant 0 : i32
    %c0_i32_0 = arith.constant 0 : i32
    %c0_i32_1 = arith.constant 0 : i32
    return %arg0, %c0_i32, %c0_i32_0 : i32, i32, i32
  }
  func.func @transform_4(%arg0: i32, %arg1: i32) -> (i32, i32, i32) {
    %c0_i32 = arith.constant 0 : i32
    %c0_i32_0 = arith.constant 0 : i32
    %c0_i32_1 = arith.constant 0 : i32
    return %arg0, %c0_i32, %c0_i32_0 : i32, i32, i32
  }
  func.func @transform_5(%arg0: i32, %arg1: i32) -> (i32, i32, i32) {
    %c0_i32 = arith.constant 0 : i32
    %c0_i32_0 = arith.constant 0 : i32
    %c0_i32_1 = arith.constant 0 : i32
    return %arg0, %c0_i32, %c0_i32_0 : i32, i32, i32
  }
}

</mosaic_0001>

<bundles_post_ra>
// kernel: tpu_custom_call.1
= control target key start
LH: loop header
LB: loop body
LE: loop exit
PB: predicated region body
PF: predicated region fallthrough
CT: control target
= control target key end

     0   :  { %s115_s0 = inlined_call_operand.vmem [shape: s32[32,128], index: 0, kind: input, shape index: {}]   ;;  %s116_s1 = inlined_call_operand.hbm [shape: f32[32,128], index: 1, kind: output, shape index: {}]  }
   0x1   :  { %v9_v0 = vld [vmem:[%s115_s0] sm:$0xff]  ;;  %v10_v1 = vld [vmem:[%s115_s0 + $0x8] sm:$0xff]  ;;  %v11_v2 = vld [vmem:[%s115_s0 + $0x10] sm:$0xff] }
   0x2   :  { %vm13_vm0 = vcmp.ne.s32.totalorder %v9_v0, 0  ;;  %vm14_vm1 = vcmp.ne.s32.totalorder %v10_v1, 0  ;;  %vm15_vm2 = vcmp.ne.s32.totalorder %v11_v2, 0  ;;  %v12_v3 = vld [vmem:[%s115_s0 + $0x18] sm:$0xff] }
   0x3   :  { %6 = vsyncpa [#allocation3], 0  ;;  %v77_v4 = vmov 0.0   ;;  %vm16_vm3 = vcmp.ne.s32.totalorder %v12_v3, 0  ;;  %s78_s14 = smov [#allocation2]  }
   0x4   :  { %v45_v5 = vsel %vm13_vm0, 1.0, %v77_v4  ;;  %v46_v6 = vsel %vm14_vm1, 1.0, %v77_v4  ;;  %v47_v7 = vsel %vm15_vm2, 1.0, %v77_v4  ;;  %s34_s15 = sshll.u32 %s78_s14, 4  ;;  %v48_v8 = vsel %vm16_vm3, 1.0, %v77_v4  ;;  %s35_s15 = int_to_ptr.vmem [resolvable:$true] %s34_s15 }
   0x5   :  { %25 = vst [vmem:[#allocation2] sm:$0xff] %v45_v5  ;;  %26 = vst [vmem:[#allocation2 + $0x8] sm:$0xff] %v46_v6  ;;  %s53_s16 = scalar_lea.vmem %s35_s15, 512  ;;  %p58_p1 = scmp.lt.s32.totalorder %s35_s15, %s35_s15 }
   0x6   :  { %27 = vst [vmem:[#allocation2 + $0x10] sm:$0xff] %v47_v7  ;;  %28 = vst [vmem:[#allocation2 + $0x18] sm:$0xff] %v48_v8  ;;  %p54_p0 = scmp.ne.s32.totalorder %s35_s15, %s53_s16  ;;  %p59_p2 = scmp.lt.s32.totalorder %s53_s16, %s53_s16 }
   0x8   :  { %p60_p3 = por %p59_p2, %p58_p1 }
   0xa   :  { %p61_p4 = pnand %p60_p3, %p54_p0 }
   0xc   :  { %64 = shalt.err (!%p61_p4)
}
   0xd   :  { %s65_s18 = scalar_lea.hbm %s116_s1, 512 }
   0xe   :  { %p66_p5 = scmp.ne.s32.totalorder %s116_s1, %s65_s18  ;;  %p69_p6 = scmp.lt.u32.totalorder %s65_s18, %s116_s1 }
  0x10   :  { %p71_p7 = pnand %p69_p6, %p66_p5 }
  0x12   :  { %74 = shalt.err (!%p71_p7)
}
  0x13   :  { %s79_s23 = smov 128   ;;  %s80_s24 = smov 8  }
  0x14   :  { %40 = dma.vmem_to_hbm [thread:$0]  %s35_s15, 512, %s116_s1, [#allocation3], %s79_s23, %s79_s23, %s80_s24  }
  0x15   :  { %75 = dma.done.wait [#allocation3], 512  }
  0x16   :  { %76 = vsyncadd [#allocation3], 4294966784 }
  0x17   :  { %44 = vsyncpa [#allocation3], 1 }

// kernel: _silog_loss_impl.1
= control target key start
LH: loop header
LB: loop body
LE: loop exit
PB: predicated region body
PF: predicated region fallthrough
CT: control target
= control target key end

     0   :  { %v236_v1 = vmov 0   ;;  %v237_v40 = vmov 0.0   ;;  %s344_s2 = inlined_call_operand.vmem [shape: s8[32,128], index: 2, kind: input, shape index: {}]   ;;  %s345_s0 = inlined_call_operand.vmem [shape: f32[32,128], index: 0, kind: input, shape index: {}]   ;;  %s346_s1 = inlined_call_operand.vmem [shape: f32[32,128], index: 1, kind: input, shape index: {}]   ;;  %s347_s5 = inlined_call_operand.vmem [shape: f32[1,8,128], index: 5, kind: output, shape index: {2}]   ;;  %s348_s3 = inlined_call_operand.vmem [shape: f32[1,8,128], index: 3, kind: output, shape index: {0}]   ;;  %s349_s4 = inlined_call_operand.vmem [shape: f32[1,8,128], index: 4, kind: output, shape index: {1}]  }
   0x1   :  { %v87_v0 = vld [vmem:[%s344_s2] sm:$0xff]  ;;  %v90_v19 = vld [vmem:[%s345_s0 + $0x8] sm:$0xff]  ;;  %v91_v20 = vld [vmem:[%s345_s0 + $0x10] sm:$0xff] }
   0x2   :  { %vm88_vm0 = vnez %v87_v0  ;;  %v89_v18 = vld [vmem:[%s345_s0] sm:$0xff]  ;;  %v92_v25 = vld [vmem:[%s345_s0 + $0x18] sm:$0xff]  ;;  %v135_v35 = vld [vmem:[%s346_s1 + $0x8] sm:$0xff] }
   0x3   :  { %v93_v2 = vsel %vm88_vm0, 16843009, %v236_v1  ;;  %v134_v30 = vld [vmem:[%s346_s1] sm:$0xff]  ;;  %v136_v37 = vld [vmem:[%s346_s1 + $0x10] sm:$0xff]  ;;  %v137_v38 = vld [vmem:[%s346_s1 + $0x18] sm:$0xff] }
   0x4   :  { %v94_v3 = vunpack.c.0.s8 %v93_v2  ;;  %v95_v4 = vunpack.c.1.s8 %v93_v2  ;;  %v96_v5 = vunpack.c.2.s8 %v93_v2  ;;  %v97_v6 = vunpack.c.3.s8 %v93_v2 }
   0x6   :  { %v98_v7 = vpack.c.b16 %v94_v3, %v94_v3  ;;  %v100_v8 = vpack.c.b16 %v95_v4, %v95_v4  ;;  %v102_v9 = vpack.c.b16 %v96_v5, %v96_v5  ;;  %v104_v10 = vpack.c.b16 %v97_v6, %v97_v6 }
   0x8   :  { %v99_v11 = vpack.c.b8 %v98_v7, %v98_v7  ;;  %v101_v12 = vpack.c.b8 %v100_v8, %v100_v8  ;;  %v103_v13 = vpack.c.b8 %v102_v9, %v102_v9  ;;  %v105_v14 = vpack.c.b8 %v104_v10, %v104_v10 }
   0xa   :  { %vm106_vm1 = vnez %v99_v11  ;;  %vm107_vm2 = vnez %v101_v12  ;;  %vm108_vm3 = vnez %v103_v13  ;;  %vm109_vm4 = vnez %v105_v14 }
   0xb   :  { %v110_v15 = vsel %vm106_vm1, 16843009, %v236_v1  ;;  %v111_v16 = vsel %vm107_vm2, 16843009, %v236_v1  ;;  %v112_v17 = vsel %vm108_vm3, 16843009, %v236_v1 }
   0xc   :  { %v113_v21 = vsel %vm109_vm4, 16843009, %v236_v1  ;;  %v114_v22 = vunpack.c.0.s8 %v110_v15  ;;  %v115_v23 = vunpack.c.0.s8 %v111_v16  ;;  %v116_v24 = vunpack.c.0.s8 %v112_v17 }
   0xd   :  { %v117_v26 = vunpack.c.0.s8 %v113_v21 }
   0xe   :  { %vm283_vm5 = vcmp.ne.s32.totalorder %v114_v22, 0  ;;  %vm287_vm6 = vcmp.ne.s32.totalorder %v115_v23, 0  ;;  %vm291_vm7 = vcmp.ne.s32.totalorder %v116_v24, 0 }
   0xf   :  { %vm298_vm8 = vcmp.ne.s32.totalorder %v117_v26, 0  ;;  %v122_v32 = vsel %vm283_vm5, %v89_v18, 1.0  ;;  %v123_v33 = vsel %vm287_vm6, %v90_v19, 1.0  ;;  %v124_v34 = vsel %vm291_vm7, %v91_v20, 1.0 }
  0x10   :  { %v125_v36 = vsel %vm298_vm8, %v92_v25, 1.0  ;;  %220 = vlog2.f32 %v122_v32  ;;  %v138_v39 = vsel %vm283_vm5, %v134_v30, 1.0  ;;  %v214_v41 = vsel %vm283_vm5, 1.0, %v237_v40 }
  0x11   :  { %222 = vlog2.f32 %v123_v33  ;;  %v139_v42 = vsel %vm287_vm6, %v135_v35, 1.0  ;;  %v215_v43 = vsel %vm287_vm6, 1.0, %v237_v40  ;;  %v216_v44 = vsel %vm291_vm7, 1.0, %v237_v40 }
  0x12   :  { %224 = vlog2.f32 %v124_v34  ;;  %v140_v45 = vsel %vm291_vm7, %v136_v37, 1.0  ;;  %v172_v46 = vadd.f32 %v215_v43, %v214_v41  ;;  %v141_v47 = vsel %vm298_vm8, %v137_v38, 1.0 }
  0x13   :  { %226 = vlog2.f32 %v125_v36  ;;  %v217_v48 = vsel %vm298_vm8, 1.0, %v237_v40 }
  0x14   :  { %228 = vlog2.f32 %v138_v39  ;;  %v173_v49 = vadd.f32 %v216_v44, %v172_v46 }
  0x15   :  { %230 = vlog2.f32 %v139_v42 }
  0x16   :  { %232 = vlog2.f32 %v140_v45  ;;  %v174_v50 = vadd.f32 %v217_v48, %v173_v49 }
  0x17   :  { %234 = vlog2.f32 %v141_v47 }
  0x18   :  { %183 = vst [vmem:[%s347_s5] sm:$0xff] %v174_v50 }
  0x1a   :  { %v221_v51 = vpop.eup %220 }
  0x1b   :  { %v223_v52 = vpop.eup %222  ;;  %v127_v55 = vmul.f32 0.6931472, %v221_v51 }
  0x1c   :  { %v225_v53 = vpop.eup %224  ;;  %v129_v57 = vmul.f32 0.6931472, %v223_v52 }
  0x1d   :  { %v227_v54 = vpop.eup %226  ;;  %v131_v59 = vmul.f32 0.6931472, %v225_v53 }
  0x1e   :  { %v229_v56 = vpop.eup %228  ;;  %v133_v62 = vmul.f32 0.6931472, %v227_v54 }
  0x1f   :  { %v231_v58 = vpop.eup %230  ;;  %v143_v60 = vmul.f32 0.6931472, %v229_v56 }
  0x20   :  { %v233_v61 = vpop.eup %232  ;;  %v145_v63 = vmul.f32 0.6931472, %v231_v58 }
  0x21   :  { %v235_v0 = vpop.eup %234  ;;  %v147_v1 = vmul.f32 0.6931472, %v233_v61  ;;  %v150_v2 = vsub.f32 %v127_v55, %v143_v60 }
  0x22   :  { %v149_v3 = vmul.f32 0.6931472, %v235_v0  ;;  %v151_v4 = vsub.f32 %v129_v57, %v145_v63 }
  0x23   :  { %v152_v5 = vsub.f32 %v131_v59, %v147_v1  ;;  %v165_v6 = vmul.f32 %v150_v2, %v150_v2 }
  0x24   :  { %v153_v7 = vsub.f32 %v133_v62, %v149_v3  ;;  %v162_v8 = vadd.f32 %v151_v4, %v150_v2  ;;  %v166_v9 = vmul.f32 %v151_v4, %v151_v4 }
  0x25   :  { %v167_v10 = vmul.f32 %v152_v5, %v152_v5 }
  0x26   :  { %v163_v11 = vadd.f32 %v162_v8, %v152_v5  ;;  %v168_v12 = vmul.f32 %v153_v7, %v153_v7  ;;  %v169_v13 = vadd.f32 %v166_v9, %v165_v6 }
  0x28   :  { %v164_v14 = vadd.f32 %v163_v11, %v153_v7  ;;  %v170_v15 = vadd.f32 %v169_v13, %v167_v10 }
  0x2a   :  { %v171_v16 = vadd.f32 %v170_v15, %v168_v12  ;;  %177 = vst [vmem:[%s348_s3] sm:$0xff] %v164_v14 }
  0x2c   :  { %180 = vst [vmem:[%s349_s4] sm:$0xff] %v171_v16 }

</bundles_post_ra>
